<compile_context>
chip_gen: v5e
topology: v5e:2x2
jax: 0.10.0
libtpu: 0.0.40
codegen_flags: <defaults>
</compile_context>

<pallas_src>
import functools

import jax
import jax.numpy as jnp
from jax.experimental import pallas as pl
from jax.experimental.pallas import tpu as pltpu

MXU_DTYPE = jnp.bfloat16   # MXU operand dtype (accumulation stays f32 everywhere)
NOUT_PAD = 128             # lane-dense padded classifier width (sliced to 2 outside)


def _gat_kernel(x_all_ref, x_blk_ref, w_gat_ref, a_src_ref, a_dst_ref,
                adj_ref, w_fc_ref, fc_bias_ref, out_ref, *,
                num_heads, out_channels):
    H, C = num_heads, out_channels

    w_gat = w_gat_ref[...]                                     # [Fin, H*C] bf16
    # GAT projection: bf16 MXU operands, f32 accumulation.
    xp_all = jnp.dot(x_all_ref[...].astype(MXU_DTYPE), w_gat,
                     preferred_element_type=jnp.float32)       # [N,  H*C] (all source nodes)
    xp_blk = jnp.dot(x_blk_ref[...].astype(MXU_DTYPE), w_gat,
                     preferred_element_type=jnp.float32)       # [Tn, H*C] (this block's dst rows)

    # Attention-logit pieces on the VPU (tiny [N,8]x[8,4] matmuls would idle the MXU).
    xp_src_w = xp_all * a_src_ref[...]                         # [N,  H*C]
    xp_dst_w = xp_blk * a_dst_ref[...]                         # [Tn, H*C]
    xp_src_w_t = xp_src_w.T                                    # [H*C, N]  single hoisted transpose
    xp_all_mxu = xp_all.astype(MXU_DTYPE)                      # reused by every head's aggregation

    # Adjacency mask work hoisted out of the head loop: one compare + one select total.
    mask_bias = jnp.where(adj_ref[...] > 0,
                          jnp.float32(0.0), jnp.float32(-1e30))  # [Tn, N]

    w_fc = w_fc_ref[...]                                       # [H*C, NOUT_PAD] f32
    y = fc_bias_ref[...]                                       # [1, NOUT_PAD] = gat_bias@W_fc + b_fc

    # H is a small compile-time constant -> unrolled; temporaries are reused per head.
    for h in range(H):
        sl = slice(h * C, (h + 1) * C)
        a_src_row = jnp.sum(xp_src_w_t[sl, :], axis=0, keepdims=True)   # [1, N]
        a_dst_col = jnp.sum(xp_dst_w[:, sl], axis=-1, keepdims=True)    # [Tn, 1]
        logits = a_dst_col + a_src_row                                  # [Tn, N]
        logits = jnp.where(logits > 0, logits, 0.2 * logits)            # leaky_relu(0.2)
        logits = logits + mask_bias                                     # additive mask
        m = jnp.max(logits, axis=-1, keepdims=True)                     # finite (self-loops)
        p = jnp.exp(logits - m)                 # masked entries underflow to exactly 0
        denom = jnp.sum(p, axis=-1, keepdims=True)
        # Aggregate with UNNORMALIZED p; normalize the small [Tn, C] result instead of [Tn, N].
        out_h = jnp.dot(p.astype(MXU_DTYPE), xp_all_mxu[:, sl],
                        preferred_element_type=jnp.float32)             # [Tn, C]
        out_h = out_h * pl.reciprocal(denom, approx=False)
        # Fused classifier accumulation (replaces concat(head_outs) @ W_fc).
        y = y + jnp.dot(out_h, w_fc[sl, :], preferred_element_type=jnp.float32)

    out_ref[...] = y                                                    # [Tn, NOUT_PAD]


def gat_model_forward(x, adj, params, *, num_heads, out_channels, tile_n=8):
    N, f_in = x.shape
    H, C = num_heads, out_channels
    assert N % tile_n == 0 and tile_n % 8 == 0, "tile_n must be a multiple of 8 dividing N"

    w_fc = params["w_fc"]                                     # [H*C, n_out] f32
    n_out = w_fc.shape[1]
    # Lane-dense output: pad classifier to 128 columns -> unmasked full-lane stores.
    w_fc_pad = jnp.zeros((H * C, NOUT_PAD), jnp.float32).at[:, :n_out].set(w_fc)
    # Fold gat_bias through the classifier once (exact algebra).
    fc_bias = params["gat_bias"] @ w_fc + params["b_fc"]      # [1, n_out]
    fc_bias_pad = jnp.zeros((1, NOUT_PAD), jnp.float32).at[:, :n_out].set(fc_bias)

    att_src_flat = params["att_src"].reshape(1, H * C)        # head h -> cols h*C:(h+1)*C
    att_dst_flat = params["att_dst"].reshape(1, H * C)
    w_gat_mxu = params["w_gat"].astype(MXU_DTYPE)

    kernel = functools.partial(_gat_kernel, num_heads=H, out_channels=C)
    y_pad = pl.pallas_call(
        kernel,
        out_shape=jax.ShapeDtypeStruct((N, NOUT_PAD), jnp.float32),
        grid_spec=pltpu.PrefetchScalarGridSpec(
            num_scalar_prefetch=0,
            grid=(N // tile_n,),                              # destination-row tiles
            in_specs=[
                pl.BlockSpec((N, f_in), lambda i: (0, 0)),          # x: all source rows
                pl.BlockSpec((tile_n, f_in), lambda i: (i, 0)),     # x: this block's dst rows
                pl.BlockSpec((f_in, H * C), lambda i: (0, 0)),      # W_gat (bf16)
                pl.BlockSpec((1, H * C), lambda i: (0, 0)),         # att_src (flattened)
                pl.BlockSpec((1, H * C), lambda i: (0, 0)),         # att_dst (flattened)
                pl.BlockSpec((tile_n, N), lambda i: (i, 0)),        # adjacency row tile
                pl.BlockSpec((H * C, NOUT_PAD), lambda i: (0, 0)),  # padded W_fc
                pl.BlockSpec((1, NOUT_PAD), lambda i: (0, 0)),      # folded fc bias
            ],
            out_specs=pl.BlockSpec((tile_n, NOUT_PAD), lambda i: (i, 0)),
        ),
        compiler_params=pltpu.CompilerParams(
            dimension_semantics=("parallel",)),               # row tiles are independent
    )(x, x, w_gat_mxu, att_src_flat, att_dst_flat, adj, w_fc_pad, fc_bias_pad)
    return y_pad[:, :n_out]


def build_params(key, in_features, out_channels, num_heads):
    H, C = num_heads, out_channels
    ks = jax.random.split(key, 6)
    return {
        "w_gat": 0.1 * jax.random.normal(ks[0], (in_features, H * C), jnp.float32),
        "att_src": 0.1 * jax.random.normal(ks[1], (H, C), jnp.float32),
        "att_dst": 0.1 * jax.random.normal(ks[2], (H, C), jnp.float32),
        "gat_bias": 0.1 * jax.random.normal(ks[3], (1, H * C), jnp.float32),
        "w_fc": 0.1 * jax.random.normal(ks[4], (H * C, 2), jnp.float32),
        "b_fc": 0.1 * jax.random.normal(ks[5], (1, 2), jnp.float32),
    }


def build_adjacency(edge_index, num_nodes):
    # adj[i, j] = 1 iff edge j -> i; GATConv removes then re-adds self-loops,
    # which is equivalent to forcing the diagonal to 1.
    adj = jnp.zeros((num_nodes, num_nodes), jnp.float32)
    adj = adj.at[edge_index[1], edge_index[0]].set(1.0)
    adj = adj.at[jnp.arange(num_nodes), jnp.arange(num_nodes)].set(1.0)
    return adj


def reference_forward_mirror(x, adj, params, *, num_heads, out_channels):
    """Plain-JAX mirror of the kernel recipe (same bf16 MXU operands, f32 accumulate)."""
    H, C = num_heads, out_channels
    w_gat = params["w_gat"].astype(MXU_DTYPE)
    xp = jnp.dot(x.astype(MXU_DTYPE), w_gat, preferred_element_type=jnp.float32)
    a_s = xp * params["att_src"].reshape(1, H * C)
    a_d = xp * params["att_dst"].reshape(1, H * C)
    mask_bias = jnp.where(adj > 0, jnp.float32(0.0), jnp.float32(-1e30))
    xp_mxu = xp.astype(MXU_DTYPE)
    y = params["gat_bias"] @ params["w_fc"] + params["b_fc"]
    for h in range(H):
        sl = slice(h * C, (h + 1) * C)
        logits = (jnp.sum(a_d[:, sl], axis=-1, keepdims=True)
                  + jnp.sum(a_s[:, sl], axis=-1, keepdims=True).T)
        logits = jnp.where(logits > 0, logits, 0.2 * logits) + mask_bias
        p = jnp.exp(logits - jnp.max(logits, axis=-1, keepdims=True))
        denom = jnp.sum(p, axis=-1, keepdims=True)
        out_h = jnp.dot(p.astype(MXU_DTYPE), xp_mxu[:, sl],
                        preferred_element_type=jnp.float32) / denom
        y = y + out_h @ params["w_fc"][sl, :]
    return y


def reference_forward_f32(x, adj, params, *, num_heads, out_channels):
    """Straight f32 GAT math (module semantics, no kernel tricks) — loose sanity check."""
    H, C = num_heads, out_channels
    xp = x @ params["w_gat"]
    outs = []
    for h in range(H):
        xp_h = xp[:, h * C:(h + 1) * C]
        a_s = xp_h @ params["att_src"][h]
        a_d = xp_h @ params["att_dst"][h]
        logits = a_d[:, None] + a_s[None, :]
        logits = jnp.where(logits > 0, logits, 0.2 * logits)
        logits = jnp.where(adj > 0, logits, -1e30)
        p = jnp.exp(logits - jnp.max(logits, axis=-1, keepdims=True))
        p = jnp.where(adj > 0, p, 0.0)
        attn = p / jnp.sum(p, axis=-1, keepdims=True)
        outs.append(attn @ xp_h)
    gat_out = jnp.concatenate(outs, axis=-1) + params["gat_bias"]
    return gat_out @ params["w_fc"] + params["b_fc"]


if __name__ == "__main__":
    # Small deterministic problem: 16 nodes, 8 input features, 4 heads,
    # GATConv out_channels = 2  ->  fc input = 2 * 4 = 8.
    N, F_IN, HEADS, OUT_CH = 16, 8, 4, 2

    key = jax.random.PRNGKey(0)
    k_x, k_p, k_e = jax.random.split(key, 3)

    x = jax.random.normal(k_x, (N, F_IN), jnp.float32)

    # Deterministic ring graph plus a few skip connections (directed edges).
    src = list(range(N)) + [0, 3, 7, 11]
    dst = [(i + 1) % N for i in range(N)] + [8, 12, 2, 5]
    edge_index = jnp.array([src, dst], dtype=jnp.int32)
    # edge_attr mirrors the module interface but is ignored (GATConv edge_dim=None).
    edge_attr = jax.random.normal(k_e, (edge_index.shape[1], 1), jnp.float32)

    adj = build_adjacency(edge_index, N)
    params = build_params(k_p, F_IN, OUT_CH, HEADS)

    y = gat_model_forward(x, adj, params, num_heads=HEADS, out_channels=OUT_CH, tile_n=8)
    y = jax.block_until_ready(y)
    assert y.shape == (N, 2)

    # Tight check vs a plain-JAX mirror of the exact kernel recipe.
    y_mirror = reference_forward_mirror(x, adj, params, num_heads=HEADS, out_channels=OUT_CH)
    assert jnp.allclose(y, y_mirror, atol=1e-4, rtol=1e-4)

    # Loose check vs straight f32 GAT math (bf16 MXU operands -> ~1e-3 deviations).
    y_f32 = reference_forward_f32(x, adj, params, num_heads=HEADS, out_channels=OUT_CH)
    assert jnp.allclose(y, y_f32, atol=1e-2, rtol=1e-2)

    print("KERNEL_OK")
</pallas_src>

<mosaic_0001>
module attributes {stable_mosaic.version = 11 : i64} {
  func.func @_gat_kernel(%arg0: i32, %arg1: memref<16x8xf32, #tpu.memory_space<vmem>>, %arg2: memref<8x8xf32, #tpu.memory_space<vmem>>, %arg3: memref<8x8xbf16, #tpu.memory_space<vmem>>, %arg4: memref<1x8xf32, #tpu.memory_space<vmem>>, %arg5: memref<1x8xf32, #tpu.memory_space<vmem>>, %arg6: memref<8x16xf32, #tpu.memory_space<vmem>>, %arg7: memref<8x128xf32, #tpu.memory_space<vmem>>, %arg8: memref<1x128xf32, #tpu.memory_space<vmem>>, %arg9: memref<8x128xf32, #tpu.memory_space<vmem>>) attributes {dimension_semantics = [#tpu.dimension_semantics<parallel>], iteration_bounds = array<i64: 2>, scalar_prefetch = 0 : i64, scratch_operands = 0 : i64, tpu.core_type = #tpu.core_type<tc>, window_params = [{pipeline_mode = #tpu.pipeline_mode<synchronous>, transform_indices = @transform_0, window_bounds = array<i64: 16, 8>}, {transform_indices = @transform_1, window_bounds = array<i64: 8, 8>}, {pipeline_mode = #tpu.pipeline_mode<synchronous>, transform_indices = @transform_2, window_bounds = array<i64: 8, 8>}, {pipeline_mode = #tpu.pipeline_mode<synchronous>, transform_indices = @transform_3, window_bounds = array<i64: 1, 8>}, {pipeline_mode = #tpu.pipeline_mode<synchronous>, transform_indices = @transform_4, window_bounds = array<i64: 1, 8>}, {transform_indices = @transform_5, window_bounds = array<i64: 8, 16>}, {pipeline_mode = #tpu.pipeline_mode<synchronous>, transform_indices = @transform_6, window_bounds = array<i64: 8, 128>}, {pipeline_mode = #tpu.pipeline_mode<synchronous>, transform_indices = @transform_7, window_bounds = array<i64: 1, 128>}, {transform_indices = @transform_8, window_bounds = array<i64: 8, 128>}]} {
    %c0 = arith.constant 0 : index
    %c0_0 = arith.constant 0 : index
    %0 = vector.load %arg3[%c0, %c0_0] : memref<8x8xbf16, #tpu.memory_space<vmem>>, vector<8x8xbf16>
    %c0_1 = arith.constant 0 : index
    %c0_2 = arith.constant 0 : index
    %1 = vector.load %arg1[%c0_1, %c0_2] : memref<16x8xf32, #tpu.memory_space<vmem>>, vector<16x8xf32>
    %2 = arith.truncf %1 : vector<16x8xf32> to vector<16x8xbf16>
    %cst = arith.constant dense<0.000000e+00> : vector<16x8xf32>
    %3 = tpu.matmul %2, %0, %cst {dimension_numbers = #tpu.dot_dimension_numbers<[1], [0], [0], [1], [0, 0, 1, 1], [], []>} : vector<16x8xbf16>, vector<8x8xbf16>, vector<16x8xf32> -> vector<16x8xf32>
    %c0_3 = arith.constant 0 : index
    %c0_4 = arith.constant 0 : index
    %4 = vector.load %arg2[%c0_3, %c0_4] : memref<8x8xf32, #tpu.memory_space<vmem>>, vector<8x8xf32>
    %5 = arith.truncf %4 : vector<8x8xf32> to vector<8x8xbf16>
    %cst_5 = arith.constant dense<0.000000e+00> : vector<8x8xf32>
    %6 = tpu.matmul %5, %0, %cst_5 {dimension_numbers = #tpu.dot_dimension_numbers<[1], [0], [0], [1], [0, 0, 1, 1], [], []>} : vector<8x8xbf16>, vector<8x8xbf16>, vector<8x8xf32> -> vector<8x8xf32>
    %c0_6 = arith.constant 0 : index
    %c0_7 = arith.constant 0 : index
    %7 = vector.load %arg4[%c0_6, %c0_7] : memref<1x8xf32, #tpu.memory_space<vmem>>, vector<1x8xf32>
    %8 = vector.broadcast %7 : vector<1x8xf32> to vector<16x8xf32>
    %9 = arith.mulf %3, %8 : vector<16x8xf32>
    %c0_8 = arith.constant 0 : index
    %c0_9 = arith.constant 0 : index
    %10 = vector.load %arg5[%c0_8, %c0_9] : memref<1x8xf32, #tpu.memory_space<vmem>>, vector<1x8xf32>
    %11 = vector.broadcast %10 : vector<1x8xf32> to vector<8x8xf32>
    %12 = arith.mulf %6, %11 : vector<8x8xf32>
    %13 = tpu.transpose %9, [1, 0] : vector<16x8xf32> -> vector<8x16xf32>
    %14 = arith.truncf %3 : vector<16x8xf32> to vector<16x8xbf16>
    %c0_10 = arith.constant 0 : index
    %c0_11 = arith.constant 0 : index
    %15 = vector.load %arg6[%c0_10, %c0_11] : memref<8x16xf32, #tpu.memory_space<vmem>>, vector<8x16xf32>
    %cst_12 = arith.constant 0.000000e+00 : f32
    %16 = vector.broadcast %cst_12 : f32 to vector<8x16xf32>
    %17 = arith.cmpf ogt, %15, %16 : vector<8x16xf32>
    %cst_13 = arith.constant 0.000000e+00 : f32
    %cst_14 = arith.constant -1.000000e+30 : f32
    %18 = vector.broadcast %cst_13 : f32 to vector<8x16xf32>
    %19 = vector.broadcast %cst_14 : f32 to vector<8x16xf32>
    %20 = arith.select %17, %18, %19 : vector<8x16xi1>, vector<8x16xf32>
    %c0_15 = arith.constant 0 : index
    %c0_16 = arith.constant 0 : index
    %21 = vector.load %arg7[%c0_15, %c0_16] : memref<8x128xf32, #tpu.memory_space<vmem>>, vector<8x128xf32>
    %c0_17 = arith.constant 0 : index
    %c0_18 = arith.constant 0 : index
    %22 = vector.load %arg8[%c0_17, %c0_18] : memref<1x128xf32, #tpu.memory_space<vmem>>, vector<1x128xf32>
    %23 = vector.extract_strided_slice %13 {offsets = [0, 0], sizes = [2, 16], strides = [1, 1]} : vector<8x16xf32> to vector<2x16xf32>
    %cst_19 = arith.constant dense<0.000000e+00> : vector<16xf32>
    %24 = vector.multi_reduction <add>, %23, %cst_19 [0] : vector<2x16xf32> to vector<16xf32>
    %25 = vector.shape_cast %24 : vector<16xf32> to vector<1x16xf32>
    %26 = vector.extract_strided_slice %12 {offsets = [0, 0], sizes = [8, 2], strides = [1, 1]} : vector<8x8xf32> to vector<8x2xf32>
    %cst_20 = arith.constant dense<0.000000e+00> : vector<8xf32>
    %27 = vector.multi_reduction <add>, %26, %cst_20 [1] : vector<8x2xf32> to vector<8xf32>
    %28 = vector.shape_cast %27 : vector<8xf32> to vector<8x1xf32>
    %29 = vector.broadcast %28 : vector<8x1xf32> to vector<8x16xf32>
    %30 = vector.broadcast %25 : vector<1x16xf32> to vector<8x16xf32>
    %31 = arith.addf %29, %30 : vector<8x16xf32>
    %cst_21 = arith.constant 0.000000e+00 : f32
    %32 = vector.broadcast %cst_21 : f32 to vector<8x16xf32>
    %33 = arith.cmpf ogt, %31, %32 : vector<8x16xf32>
    %cst_22 = arith.constant 2.000000e-01 : f32
    %34 = vector.broadcast %cst_22 : f32 to vector<8x16xf32>
    %35 = arith.mulf %34, %31 : vector<8x16xf32>
    %36 = arith.select %33, %31, %35 : vector<8x16xi1>, vector<8x16xf32>
    %37 = arith.addf %36, %20 : vector<8x16xf32>
    %cst_23 = arith.constant dense<0xFF800000> : vector<8xf32>
    %38 = vector.multi_reduction <maximumf>, %37, %cst_23 [1] : vector<8x16xf32> to vector<8xf32>
    %39 = vector.shape_cast %38 : vector<8xf32> to vector<8x1xf32>
    %40 = vector.broadcast %39 : vector<8x1xf32> to vector<8x16xf32>
    %41 = arith.subf %37, %40 : vector<8x16xf32>
    %42 = math.exp %41 : vector<8x16xf32>
    %cst_24 = arith.constant dense<0.000000e+00> : vector<8xf32>
    %43 = vector.multi_reduction <add>, %42, %cst_24 [1] : vector<8x16xf32> to vector<8xf32>
    %44 = vector.shape_cast %43 : vector<8xf32> to vector<8x1xf32>
    %45 = arith.truncf %42 : vector<8x16xf32> to vector<8x16xbf16>
    %46 = vector.extract_strided_slice %14 {offsets = [0, 0], sizes = [16, 2], strides = [1, 1]} : vector<16x8xbf16> to vector<16x2xbf16>
    %cst_25 = arith.constant dense<0.000000e+00> : vector<8x2xf32>
    %47 = tpu.matmul %45, %46, %cst_25 {dimension_numbers = #tpu.dot_dimension_numbers<[1], [0], [0], [1], [0, 0, 1, 1], [], []>} : vector<8x16xbf16>, vector<16x2xbf16>, vector<8x2xf32> -> vector<8x2xf32>
    %48 = tpu.reciprocal %44 : vector<8x1xf32> -> vector<8x1xf32>
    %49 = vector.broadcast %48 : vector<8x1xf32> to vector<8x2xf32>
    %50 = arith.mulf %47, %49 : vector<8x2xf32>
    %51 = vector.extract_strided_slice %21 {offsets = [0, 0], sizes = [2, 128], strides = [1, 1]} : vector<8x128xf32> to vector<2x128xf32>
    %cst_26 = arith.constant dense<0.000000e+00> : vector<8x128xf32>
    %52 = tpu.matmul %50, %51, %cst_26 {dimension_numbers = #tpu.dot_dimension_numbers<[1], [0], [0], [1], [0, 0, 1, 1], [], []>} : vector<8x2xf32>, vector<2x128xf32>, vector<8x128xf32> -> vector<8x128xf32>
    %53 = vector.broadcast %22 : vector<1x128xf32> to vector<8x128xf32>
    %54 = arith.addf %53, %52 : vector<8x128xf32>
    %55 = vector.extract_strided_slice %13 {offsets = [2, 0], sizes = [2, 16], strides = [1, 1]} : vector<8x16xf32> to vector<2x16xf32>
    %cst_27 = arith.constant dense<0.000000e+00> : vector<16xf32>
    %56 = vector.multi_reduction <add>, %55, %cst_27 [0] : vector<2x16xf32> to vector<16xf32>
    %57 = vector.shape_cast %56 : vector<16xf32> to vector<1x16xf32>
    %58 = vector.extract_strided_slice %12 {offsets = [0, 2], sizes = [8, 2], strides = [1, 1]} : vector<8x8xf32> to vector<8x2xf32>
    %cst_28 = arith.constant dense<0.000000e+00> : vector<8xf32>
    %59 = vector.multi_reduction <add>, %58, %cst_28 [1] : vector<8x2xf32> to vector<8xf32>
    %60 = vector.shape_cast %59 : vector<8xf32> to vector<8x1xf32>
    %61 = vector.broadcast %60 : vector<8x1xf32> to vector<8x16xf32>
    %62 = vector.broadcast %57 : vector<1x16xf32> to vector<8x16xf32>
    %63 = arith.addf %61, %62 : vector<8x16xf32>
    %cst_29 = arith.constant 0.000000e+00 : f32
    %64 = vector.broadcast %cst_29 : f32 to vector<8x16xf32>
    %65 = arith.cmpf ogt, %63, %64 : vector<8x16xf32>
    %cst_30 = arith.constant 2.000000e-01 : f32
    %66 = vector.broadcast %cst_30 : f32 to vector<8x16xf32>
    %67 = arith.mulf %66, %63 : vector<8x16xf32>
    %68 = arith.select %65, %63, %67 : vector<8x16xi1>, vector<8x16xf32>
    %69 = arith.addf %68, %20 : vector<8x16xf32>
    %cst_31 = arith.constant dense<0xFF800000> : vector<8xf32>
    %70 = vector.multi_reduction <maximumf>, %69, %cst_31 [1] : vector<8x16xf32> to vector<8xf32>
    %71 = vector.shape_cast %70 : vector<8xf32> to vector<8x1xf32>
    %72 = vector.broadcast %71 : vector<8x1xf32> to vector<8x16xf32>
    %73 = arith.subf %69, %72 : vector<8x16xf32>
    %74 = math.exp %73 : vector<8x16xf32>
    %cst_32 = arith.constant dense<0.000000e+00> : vector<8xf32>
    %75 = vector.multi_reduction <add>, %74, %cst_32 [1] : vector<8x16xf32> to vector<8xf32>
    %76 = vector.shape_cast %75 : vector<8xf32> to vector<8x1xf32>
    %77 = arith.truncf %74 : vector<8x16xf32> to vector<8x16xbf16>
    %78 = vector.extract_strided_slice %14 {offsets = [0, 2], sizes = [16, 2], strides = [1, 1]} : vector<16x8xbf16> to vector<16x2xbf16>
    %cst_33 = arith.constant dense<0.000000e+00> : vector<8x2xf32>
    %79 = tpu.matmul %77, %78, %cst_33 {dimension_numbers = #tpu.dot_dimension_numbers<[1], [0], [0], [1], [0, 0, 1, 1], [], []>} : vector<8x16xbf16>, vector<16x2xbf16>, vector<8x2xf32> -> vector<8x2xf32>
    %80 = tpu.reciprocal %76 : vector<8x1xf32> -> vector<8x1xf32>
    %81 = vector.broadcast %80 : vector<8x1xf32> to vector<8x2xf32>
    %82 = arith.mulf %79, %81 : vector<8x2xf32>
    %83 = vector.extract_strided_slice %21 {offsets = [2, 0], sizes = [2, 128], strides = [1, 1]} : vector<8x128xf32> to vector<2x128xf32>
    %cst_34 = arith.constant dense<0.000000e+00> : vector<8x128xf32>
    %84 = tpu.matmul %82, %83, %cst_34 {dimension_numbers = #tpu.dot_dimension_numbers<[1], [0], [0], [1], [0, 0, 1, 1], [], []>} : vector<8x2xf32>, vector<2x128xf32>, vector<8x128xf32> -> vector<8x128xf32>
    %85 = arith.addf %54, %84 : vector<8x128xf32>
    %86 = vector.extract_strided_slice %13 {offsets = [4, 0], sizes = [2, 16], strides = [1, 1]} : vector<8x16xf32> to vector<2x16xf32>
    %cst_35 = arith.constant dense<0.000000e+00> : vector<16xf32>
    %87 = vector.multi_reduction <add>, %86, %cst_35 [0] : vector<2x16xf32> to vector<16xf32>
    %88 = vector.shape_cast %87 : vector<16xf32> to vector<1x16xf32>
    %89 = vector.extract_strided_slice %12 {offsets = [0, 4], sizes = [8, 2], strides = [1, 1]} : vector<8x8xf32> to vector<8x2xf32>
    %cst_36 = arith.constant dense<0.000000e+00> : vector<8xf32>
    %90 = vector.multi_reduction <add>, %89, %cst_36 [1] : vector<8x2xf32> to vector<8xf32>
    %91 = vector.shape_cast %90 : vector<8xf32> to vector<8x1xf32>
    %92 = vector.broadcast %91 : vector<8x1xf32> to vector<8x16xf32>
    %93 = vector.broadcast %88 : vector<1x16xf32> to vector<8x16xf32>
    %94 = arith.addf %92, %93 : vector<8x16xf32>
    %cst_37 = arith.constant 0.000000e+00 : f32
    %95 = vector.broadcast %cst_37 : f32 to vector<8x16xf32>
    %96 = arith.cmpf ogt, %94, %95 : vector<8x16xf32>
    %cst_38 = arith.constant 2.000000e-01 : f32
    %97 = vector.broadcast %cst_38 : f32 to vector<8x16xf32>
    %98 = arith.mulf %97, %94 : vector<8x16xf32>
    %99 = arith.select %96, %94, %98 : vector<8x16xi1>, vector<8x16xf32>
    %100 = arith.addf %99, %20 : vector<8x16xf32>
    %cst_39 = arith.constant dense<0xFF800000> : vector<8xf32>
    %101 = vector.multi_reduction <maximumf>, %100, %cst_39 [1] : vector<8x16xf32> to vector<8xf32>
    %102 = vector.shape_cast %101 : vector<8xf32> to vector<8x1xf32>
    %103 = vector.broadcast %102 : vector<8x1xf32> to vector<8x16xf32>
    %104 = arith.subf %100, %103 : vector<8x16xf32>
    %105 = math.exp %104 : vector<8x16xf32>
    %cst_40 = arith.constant dense<0.000000e+00> : vector<8xf32>
    %106 = vector.multi_reduction <add>, %105, %cst_40 [1] : vector<8x16xf32> to vector<8xf32>
    %107 = vector.shape_cast %106 : vector<8xf32> to vector<8x1xf32>
    %108 = arith.truncf %105 : vector<8x16xf32> to vector<8x16xbf16>
    %109 = vector.extract_strided_slice %14 {offsets = [0, 4], sizes = [16, 2], strides = [1, 1]} : vector<16x8xbf16> to vector<16x2xbf16>
    %cst_41 = arith.constant dense<0.000000e+00> : vector<8x2xf32>
    %110 = tpu.matmul %108, %109, %cst_41 {dimension_numbers = #tpu.dot_dimension_numbers<[1], [0], [0], [1], [0, 0, 1, 1], [], []>} : vector<8x16xbf16>, vector<16x2xbf16>, vector<8x2xf32> -> vector<8x2xf32>
    %111 = tpu.reciprocal %107 : vector<8x1xf32> -> vector<8x1xf32>
    %112 = vector.broadcast %111 : vector<8x1xf32> to vector<8x2xf32>
    %113 = arith.mulf %110, %112 : vector<8x2xf32>
    %114 = vector.extract_strided_slice %21 {offsets = [4, 0], sizes = [2, 128], strides = [1, 1]} : vector<8x128xf32> to vector<2x128xf32>
    %cst_42 = arith.constant dense<0.000000e+00> : vector<8x128xf32>
    %115 = tpu.matmul %113, %114, %cst_42 {dimension_numbers = #tpu.dot_dimension_numbers<[1], [0], [0], [1], [0, 0, 1, 1], [], []>} : vector<8x2xf32>, vector<2x128xf32>, vector<8x128xf32> -> vector<8x128xf32>
    %116 = arith.addf %85, %115 : vector<8x128xf32>
    %117 = vector.extract_strided_slice %13 {offsets = [6, 0], sizes = [2, 16], strides = [1, 1]} : vector<8x16xf32> to vector<2x16xf32>
    %cst_43 = arith.constant dense<0.000000e+00> : vector<16xf32>
    %118 = vector.multi_reduction <add>, %117, %cst_43 [0] : vector<2x16xf32> to vector<16xf32>
    %119 = vector.shape_cast %118 : vector<16xf32> to vector<1x16xf32>
    %120 = vector.extract_strided_slice %12 {offsets = [0, 6], sizes = [8, 2], strides = [1, 1]} : vector<8x8xf32> to vector<8x2xf32>
    %cst_44 = arith.constant dense<0.000000e+00> : vector<8xf32>
    %121 = vector.multi_reduction <add>, %120, %cst_44 [1] : vector<8x2xf32> to vector<8xf32>
    %122 = vector.shape_cast %121 : vector<8xf32> to vector<8x1xf32>
    %123 = vector.broadcast %122 : vector<8x1xf32> to vector<8x16xf32>
    %124 = vector.broadcast %119 : vector<1x16xf32> to vector<8x16xf32>
    %125 = arith.addf %123, %124 : vector<8x16xf32>
    %cst_45 = arith.constant 0.000000e+00 : f32
    %126 = vector.broadcast %cst_45 : f32 to vector<8x16xf32>
    %127 = arith.cmpf ogt, %125, %126 : vector<8x16xf32>
    %cst_46 = arith.constant 2.000000e-01 : f32
    %128 = vector.broadcast %cst_46 : f32 to vector<8x16xf32>
    %129 = arith.mulf %128, %125 : vector<8x16xf32>
    %130 = arith.select %127, %125, %129 : vector<8x16xi1>, vector<8x16xf32>
    %131 = arith.addf %130, %20 : vector<8x16xf32>
    %cst_47 = arith.constant dense<0xFF800000> : vector<8xf32>
    %132 = vector.multi_reduction <maximumf>, %131, %cst_47 [1] : vector<8x16xf32> to vector<8xf32>
    %133 = vector.shape_cast %132 : vector<8xf32> to vector<8x1xf32>
    %134 = vector.broadcast %133 : vector<8x1xf32> to vector<8x16xf32>
    %135 = arith.subf %131, %134 : vector<8x16xf32>
    %136 = math.exp %135 : vector<8x16xf32>
    %cst_48 = arith.constant dense<0.000000e+00> : vector<8xf32>
    %137 = vector.multi_reduction <add>, %136, %cst_48 [1] : vector<8x16xf32> to vector<8xf32>
    %138 = vector.shape_cast %137 : vector<8xf32> to vector<8x1xf32>
    %139 = arith.truncf %136 : vector<8x16xf32> to vector<8x16xbf16>
    %140 = vector.extract_strided_slice %14 {offsets = [0, 6], sizes = [16, 2], strides = [1, 1]} : vector<16x8xbf16> to vector<16x2xbf16>
    %cst_49 = arith.constant dense<0.000000e+00> : vector<8x2xf32>
    %141 = tpu.matmul %139, %140, %cst_49 {dimension_numbers = #tpu.dot_dimension_numbers<[1], [0], [0], [1], [0, 0, 1, 1], [], []>} : vector<8x16xbf16>, vector<16x2xbf16>, vector<8x2xf32> -> vector<8x2xf32>
    %142 = tpu.reciprocal %138 : vector<8x1xf32> -> vector<8x1xf32>
    %143 = vector.broadcast %142 : vector<8x1xf32> to vector<8x2xf32>
    %144 = arith.mulf %141, %143 : vector<8x2xf32>
    %145 = vector.extract_strided_slice %21 {offsets = [6, 0], sizes = [2, 128], strides = [1, 1]} : vector<8x128xf32> to vector<2x128xf32>
    %cst_50 = arith.constant dense<0.000000e+00> : vector<8x128xf32>
    %146 = tpu.matmul %144, %145, %cst_50 {dimension_numbers = #tpu.dot_dimension_numbers<[1], [0], [0], [1], [0, 0, 1, 1], [], []>} : vector<8x2xf32>, vector<2x128xf32>, vector<8x128xf32> -> vector<8x128xf32>
    %147 = arith.addf %116, %146 : vector<8x128xf32>
    %c0_51 = arith.constant 0 : index
    %c0_52 = arith.constant 0 : index
    %148 = vector.load %arg9[%c0_51, %c0_52] : memref<8x128xf32, #tpu.memory_space<vmem>>, vector<8x128xf32>
    tpu.vector_store %arg9[%c0_51, %c0_52], %147 {strides = array<i32>} : memref<8x128xf32, #tpu.memory_space<vmem>>, vector<8x128xf32>,
    return
  }
  func.func @transform_0(%arg0: i32) -> (i32, i32) {
    %c0_i32 = arith.constant 0 : i32
    %c0_i32_0 = arith.constant 0 : i32
    %c0_i32_1 = arith.constant 0 : i32
    return %c0_i32, %c0_i32_0 : i32, i32
  }
  func.func @transform_1(%arg0: i32) -> (i32, i32) {
    %c0_i32 = arith.constant 0 : i32
    %c0_i32_0 = arith.constant 0 : i32
    return %arg0, %c0_i32 : i32, i32
  }
  func.func @transform_2(%arg0: i32) -> (i32, i32) {
    %c0_i32 = arith.constant 0 : i32
    %c0_i32_0 = arith.constant 0 : i32
    %c0_i32_1 = arith.constant 0 : i32
    return %c0_i32, %c0_i32_0 : i32, i32
  }
  func.func @transform_3(%arg0: i32) -> (i32, i32) {
    %c0_i32 = arith.constant 0 : i32
    %c0_i32_0 = arith.constant 0 : i32
    %c0_i32_1 = arith.constant 0 : i32
    return %c0_i32, %c0_i32_0 : i32, i32
  }
  func.func @transform_4(%arg0: i32) -> (i32, i32) {
    %c0_i32 = arith.constant 0 : i32
    %c0_i32_0 = arith.constant 0 : i32
    %c0_i32_1 = arith.constant 0 : i32
    return %c0_i32, %c0_i32_0 : i32, i32
  }
  func.func @transform_5(%arg0: i32) -> (i32, i32) {
    %c0_i32 = arith.constant 0 : i32
    %c0_i32_0 = arith.constant 0 : i32
    return %arg0, %c0_i32 : i32, i32
  }
  func.func @transform_6(%arg0: i32) -> (i32, i32) {
    %c0_i32 = arith.constant 0 : i32
    %c0_i32_0 = arith.constant 0 : i32
    %c0_i32_1 = arith.constant 0 : i32
    return %c0_i32, %c0_i32_0 : i32, i32
  }
  func.func @transform_7(%arg0: i32) -> (i32, i32) {
    %c0_i32 = arith.constant 0 : i32
    %c0_i32_0 = arith.constant 0 : i32
    %c0_i32_1 = arith.constant 0 : i32
    return %c0_i32, %c0_i32_0 : i32, i32
  }
  func.func @transform_8(%arg0: i32) -> (i32, i32) {
    %c0_i32 = arith.constant 0 : i32
    %c0_i32_0 = arith.constant 0 : i32
    return %arg0, %c0_i32 : i32, i32
  }
}

</mosaic_0001>

<bundles_post_ra>
// kernel: tpu_custom_call.1
= control target key start
LH: loop header
LB: loop body
LE: loop exit
PB: predicated region body
PF: predicated region fallthrough
CT: control target
= control target key end

     0   :  { %13 = vsyncpa [#allocation3], 0  ;;  %s1227_s0 = inlined_call_operand.vmem [shape: f32[16,8], index: 0, kind: input, shape index: {}]   ;;  %s1228_s1 = inlined_call_operand.vmem [shape: f32[16,8], index: 1, kind: input, shape index: {}]   ;;  %s1229_s2 = inlined_call_operand.vmem [shape: bf16[8,8], index: 2, kind: input, shape index: {}]   ;;  %s1230_s3 = inlined_call_operand.vmem [shape: f32[1,8], index: 3, kind: input, shape index: {}]   ;;  %s1231_s4 = inlined_call_operand.vmem [shape: f32[1,8], index: 4, kind: input, shape index: {}]   ;;  %s1232_s5 = inlined_call_operand.vmem [shape: f32[16,16], index: 5, kind: input, shape index: {}]   ;;  %s1233_s6 = inlined_call_operand.vmem [shape: f32[8,128], index: 6, kind: input, shape index: {}]   ;;  %s1234_s7 = inlined_call_operand.vmem [shape: f32[1,128], index: 7, kind: input, shape index: {}]   ;;  %s1235_s8 = inlined_call_operand.hbm [shape: f32[16,128], index: 8, kind: output, shape index: {}]  }
   0x1   :  { %15 = vsyncpa [#allocation3 + $0x1], 0  ;;  %s1073_s27 = smov 0   ;;  %s1075_s28 = smov 0  }
   0x2   :  { %s1077_s29 = smov 0   ;;  %s1079_s30 = smov 0  }
   0x3 LB: > { %s1094_s9 = sadd.s32 4294967295, %s1022_s30   ;;  %s872_s10 = sadd.s32 4294967294, %s1022_s30   ;;  %s1022_s30 = sphi %s1079_s30, %s1241_s30   ;;  %s1018_s29 = sphi %s1077_s29, %s1240_s29   ;;  %s1014_s28 = sphi %s1075_s28, %s1239_s28   ;;  %s1010_s27 = sphi %s1073_s27, %s1238_s27  }
   0x4   : > { %s1098_s11 = sadd.s32 1, %s1022_s30   ;;  %s206_s12 = sadd.s32 1, %s1018_s29 }
   0x5   : > { %s203_s13 = ssub.s32 %s1022_s30, %s1098_s11  ;;  %p216_p0 = scmp.ne.s32.totalorder %s1018_s29, %s1014_s28 }
   0x6   : > { %p204_p1 = scmp.eq.s32.totalorder %s203_s13, 0  ;;  %p217_p2 = scmp.eq.s32.totalorder %s1094_s9, 1 }
   0x7   : > { %p222_p3 = scmp.ne.s32.totalorder %s1014_s28, %s1010_s27  ;;  %p223_p4 = scmp.eq.s32.totalorder %s872_s10, 1 }
   0x8   : > { %s1109_s14 = scalar_select %p204_p1, %s1018_s29, %s206_s12  }
   0x9   : > { %p1111_p5 = por %p217_p2, %p216_p0  ;;  %p1115_p6 = por %p223_p4, %p222_p3 }
   0xa   : > { %p875_p7 = scmp.ge.s32.totalorder %s1022_s30, 1  ;;  %p273_p8 = scmp.lt.s32.totalorder %s1022_s30, 3 }
   0xc   : > { %p274_p9 = pnand %p875_p7, %p273_p8 }
   0xd   : > { %p310_p10 = scmp.lt.s32.totalorder (!%p274_p9), %s1094_s9, 1  ;;  %s1024_s17 = smov (!%p274_p9), 122  }
   0xe   : > { %277 = sbr.rel (%p274_p9) target bundleno = 909 (0x38d), region = 52  ;;  %s1025_s18 = smov (!%p274_p9), 126  }
   0xf   : > { %s1026_s21 = smov (!%p274_p9), 124   ;;  %s307_s13 = sand.u32 (!%p274_p9), 1, %s1014_s28  }
  0x13   : > { %v319_v0 = vld [vmem:[%s1229_s2] sm:$0xf]  ;;  %vm327_vm0 = vcmask 1043456   ;;  %s1126_s19 = scalar_select %p310_p10, %s1094_s9, 1  ;;  %vm323_vm1 = vcmask 64512   ;;  %v321_v5 = vld [vmem:[%s1227_s0 + $0x8] sm:$0xff] }
  0x14   : > { %v329_v1 = vsel %vm327_vm0, %v319_v0, 0  ;;  %v320_v4 = vld [vmem:[%s1227_s0] sm:$0xff]  ;;  %vm421_vm2 = vcmask 15360   ;;  %vm413_vm3 = vcmask 123904   ;;  %vm430_vm6 = vcmask 130048  }
  0x15   : > { %357 = vmatpush.bf16.msra.mxu1 %v329_v1  ;;  %338 = vmatpush.bf16.msra.mxu0 %v329_v1  ;;  %s877_s20 = sshll.u32 %s1126_s19, 3  ;;  %v322_v6 = vpack.c.bf16 %v321_v5, %v320_v4  ;;  %v941_v7 = vld [vmem:[%s1231_s4] ss:$0 sm:$0xff]  ;;  %vm481_vm10 = vcmask 1041408   ;;  %s786_s19 = scalar_lea.sflag [#allocation3], %s307_s13 }
  0x16   : > { %s313_s23 = scalar_lea.vmem %s1228_s1, %s877_s20  ;;  %v942_v25 = vld [vmem:[%s1230_s3] ss:$0 sm:$0xff]  ;;  %s317_s26 = scalar_lea.vmem %s1232_s5, %s877_s20 }
  0x17   : > { %v345_v2 = vld [vmem:[%s313_s23] sm:$0xff] }
  0x18   : > { %v346_v3 = vpack.c.bf16 %v345_v2, %v345_v2  ;;  %879 = vmatmul.msk.bf16.vlgmr.msra.gmra.mxu0 %vm323_vm1, %v322_v6  ;;  %v408_v50 = vld [vmem:[%s317_s26] sm:$0xff]  ;;  %v1027_v2 = vmov -1e+30  }
  0x19   : > { %vm409_vm4 = vcmp.gt.f32.partialorder %v408_v50, 0.0  ;;  %v411_v50 = vld [vmem:[%s1233_s6] sm:$0xff] }
  0x1a   : > { %880 = vmatmul.msk.bf16.vlgmr.msra.gmra.mxu1 %vm323_vm1, %v346_v3  ;;  %v410_v3 = vsel %vm409_vm4, 0.0, %v1027_v2 }
  0x95   : > { %v340_v12 = vpop.f32.mrf.mxu0 }
  0x96   : > { %v406_v13 = vpack.c.bf16 %v340_v12, %v340_v12  ;;  %v367_v26 = vmul.f32 %v942_v25, %v340_v12 }
  0x97   : > { %v359_v8 = vpop.f32.mrf.mxu1 }
  0x98   : > { %v373_v9 = vmul.f32 %v941_v7, %v359_v8  ;;  %v443_v15 = vunpack.c.l.b16 %v406_v13 }
  0x9a   : > { %702 = vrot.lane.b32.xlu1 %v373_v9, %s1024_s17  ;;  %520 = vrot.lane.b32.xlu0 %v373_v9, %s1025_s18  ;;  %v422_v11 = vsel %vm421_vm2, %v373_v9, 0.0 }
  0x9d   : > { %v342_v14 = vpop.f32.mrf.mxu0 }
  0x9e   : > { %v407_v16 = vpack.c.bf16 %v342_v14, %v342_v14  ;;  %v368_v27 = vmul.f32 %v942_v25, %v342_v14 }
  0x9f   : > { %v361_v10 = vpop.f32.mrf.mxu1 }
  0xa0   : > { %v444_v21 = vunpack.c.l.b16 %v407_v16 }
  0xa2   : > { %611 = vrot.lane.b32.xlu0 %v373_v9, %s1026_s21  ;;  %v1147_v22 = vpack.c.b16 %v444_v21, %v443_v15 }
  0xa4   : > { %457 = vmatpush.bf16.msra.mxu2 %v1147_v22 }
  0xa8   : > { %882 = vmatpush.msk.msrb.mxu2 %vm481_vm10, %v411_v50 }
  0xc4   : > { %423 = vadd.xlane.f32.xlu1 %v422_v11 }
 0x10c   : > { %v703_v17 = vpop.permute.xlu1 %702  ;;  %v521_v18 = vpop.permute.xlu0 %520 }
 0x10d   : > { %v523_v19 = vsel %vm421_vm2, %v521_v18, 0.0  ;;  %v705_v20 = vsel %vm421_vm2, %v703_v17, 0.0 }
 0x10e   : > { %524 = vadd.xlane.f32.xlu2 %v523_v19  ;;  %706 = vadd.xlane.f32.xlu1 %v705_v20 }
 0x114   : > { %v612_v23 = vpop.permute.xlu0 %611 }
 0x115   : > { %v614_v24 = vsel %vm421_vm2, %v612_v23, 0.0 }
 0x116   : > { %615 = vadd.xlane.f32.xlu0 %v614_v24 }
 0x127   : > { %541 = vrot.lane.b32.xlu1 %v1147_v22, %s1025_s18  ;;  %s894_s18 = sshll.u32 %s1094_s9, 3 }
 0x128   : > { %s796_s23 = scalar_lea.hbm %s1235_s8, %s894_s18 }
 0x129   : > { %s800_s26 = sshll.u32 %s796_s23, 4  ;;  %s801_s26 = int_to_ptr.hbm [resolvable:$true] %s800_s26 }
 0x12a   : > { %s974_s20 = sshra.s32 %s801_s26, 4  ;;  %s975_s20 = int_to_ptr.hbm [resolvable:$true] %s974_s20 }
 0x12b   : > { %s976_s9 = scalar_lea.hbm %s975_s20, 8  ;;  %p981_p0 = scmp.lt.s32.totalorder %s975_s20, %s1235_s8 }
 0x12c   : > { %p977_p11 = scmp.ne.s32.totalorder %s975_s20, %s976_s9 }
 0x12e   : > { %p978_p12 = pnand %p977_p11, %p1111_p5 }
 0x12f   : > { %723 = vrot.lane.b32.xlu1 %v1147_v22, %s1024_s17  ;;  %s876_s17 = sshll.u32 %s307_s13, 3 }
 0x130   : > { %s309_s24 = scalar_lea.vmem [#allocation2], %s876_s17  ;;  %p979_p13 = pneg %p978_p12 }
 0x131   : > { %s798_s25 = sshll.u32 %s309_s24, 4  ;;  %s980_s17 = scalar_lea.hbm %s1235_s8, 16  ;;  %s799_s25 = int_to_ptr.vmem [resolvable:$true] %s798_s25 }
 0x132   : > { %p982_p1 = scmp.lt.s32.totalorder %s980_s17, %s976_s9 }
 0x134   : > { %p983_p2 = por %p982_p1, %p981_p0 }
 0x136   : > { %p984_p3 = pnand %p983_p2, %p979_p13 }
 0x137   : > { %374 = vxpose.xlu2.b32.start [1/2] (short) (narrow) %v367_v26, 8  ;;  %v424_v28 = vpop.xlane.xlu1 %423 }
 0x13f   : > { %375 = vxpose.xlu2.b32.end [2/2] (short) (narrow) %v368_v27, 8 }
 0x181   : > { %v1156_v29 = vpop.xlane.xlu1 %706  ;;  %v525_v32 = vpop.xlane.xlu2 %524 }
 0x189   : > { %v616_v1 = vpop.xlane.xlu0 %615 }
 0x199   : > { %v542_v30 = vpop.permute.xlu1 %541 }
 0x19a   : > { %554 = vmatpush.bf16.msra.mxu3 %v542_v30 }
 0x1a1   : > { %v724_v31 = vpop.permute.xlu1 %723 }
 0x1a2   : > { %736 = vmatpush.bf16.msrb.mxu3 %v724_v31 }
 0x1d0   : > { %v390_v33 = vpop.trf.xlu2 }
 0x1d1   : > { %v414_v34 = vsel %vm413_vm3, %v390_v33, 0.0  ;;  %v510_v35 = vrot.slane %v390_v33, 2  ;;  %v602_v36 = vrot.slane %v390_v33, 4  ;;  %v693_v37 = vrot.slane %v390_v33, 6 }
 0x1d2   : > { %v415_v38 = vrot.slane %v414_v34, 4 }
 0x1d3   : > { %v512_v39 = vsel %vm413_vm3, %v510_v35, 0.0  ;;  %v604_v40 = vsel %vm413_vm3, %v602_v36, 0.0  ;;  %v695_v41 = vsel %vm413_vm3, %v693_v37, 0.0 }
 0x1d4   : > { %v416_v42 = vadd.f32 %v415_v38, %v414_v34  ;;  %v513_v43 = vrot.slane %v512_v39, 4  ;;  %v605_v44 = vrot.slane %v604_v40, 4  ;;  %v696_v45 = vrot.slane %v695_v41, 4 }
 0x1d6   : > { %v417_v46 = vrot.slane %v416_v42, 2  ;;  %v514_v47 = vadd.f32 %v513_v43, %v512_v39  ;;  %v606_v48 = vadd.f32 %v605_v44, %v604_v40  ;;  %v697_v49 = vadd.f32 %v696_v45, %v695_v41 }
 0x1d8   : > { %v418_v51 = vadd.f32 %v417_v46, %v416_v42  ;;  %v515_v52 = vrot.slane %v514_v47, 2  ;;  %v607_v53 = vrot.slane %v606_v48, 2  ;;  %v698_v54 = vrot.slane %v697_v49, 2 }
 0x1da   : > { %v419_v55 = vrot.slane %v418_v51, 1  ;;  %v516_v56 = vadd.f32 %v515_v52, %v514_v47  ;;  %v608_v57 = vadd.f32 %v607_v53, %v606_v48  ;;  %v699_v58 = vadd.f32 %v698_v54, %v697_v49 }
 0x1db   : > { %v666_v52 = vrot.slane %v411_v50, 4  ;;  %v757_v53 = vrot.slane %v411_v50, 6 }
 0x1dc   : > { %v420_v59 = vadd.f32 %v419_v55, %v418_v51  ;;  %v517_v60 = vrot.slane %v516_v56, 1  ;;  %v609_v61 = vrot.slane %v608_v57, 1  ;;  %v700_v4 = vrot.slane %v699_v58, 1 }
 0x1dd   : > { %v575_v51 = vrot.slane %v411_v50, 2 }
 0x1de   : > { %v425_v62 = vadd.f32 %v424_v28, %v420_v59  ;;  %v518_v63 = vadd.f32 %v517_v60, %v516_v56  ;;  %v610_v0 = vadd.f32 %v609_v61, %v608_v57  ;;  %v701_v13 = vadd.f32 %v700_v4, %v699_v58 }
 0x1df   : > { %885 = vmatpush.msk.msrb.mxu0 %vm481_vm10, %v575_v51 }
 0x1e0   : > { %vm426_vm5 = vcmp.gt.f32.partialorder %v425_v62, 0.0  ;;  %v427_v5 = vmul.f32 0.2, %v425_v62  ;;  %v526_v6 = vadd.f32 %v525_v32, %v518_v63  ;;  %v617_v7 = vadd.f32 %v616_v1, %v610_v0 }
 0x1e1   : > { %v708_v18 = vadd.f32 %v1156_v29, %v701_v13  ;;  %891 = vmatpush.msk.msra.mxu0 %vm481_vm10, %v757_v53 }
 0x1e2   : > { %v428_v8 = vsel %vm426_vm5, %v425_v62, %v427_v5  ;;  %vm527_vm7 = vcmp.gt.f32.partialorder %v526_v6, 0.0  ;;  %v528_v9 = vmul.f32 0.2, %v526_v6  ;;  %v619_v12 = vmul.f32 0.2, %v617_v7 }
 0x1e3   : > { %v429_v10 = vadd.f32 %v428_v8, %v410_v3  ;;  %vm618_vm8 = vcmp.gt.f32.partialorder %v617_v7, 0.0  ;;  %v710_v20 = vmul.f32 0.2, %v708_v18  ;;  %vm709_vm9 = vcmp.gt.f32.partialorder %v708_v18, 0.0 }
 0x1e4   : > { %v529_v11 = vsel %vm527_vm7, %v526_v6, %v528_v9  ;;  %v620_v17 = vsel %vm618_vm8, %v617_v7, %v619_v12 }
 0x1e5   : > { %v431_v14 = vsel %vm430_vm6, %v429_v10, -inf  ;;  %v530_v15 = vadd.f32 %v529_v11, %v410_v3  ;;  %v621_v19 = vadd.f32 %v620_v17, %v410_v3  ;;  %v711_v23 = vsel %vm709_vm9, %v708_v18, %v710_v20 }
 0x1e6   : > { %432 = vmax.xlane.f32.xlu2 %v431_v14  ;;  %v712_v24 = vadd.f32 %v711_v23, %v410_v3 }
 0x1e7   : > { %v531_v16 = vsel %vm430_vm6, %v530_v15, -inf  ;;  %v622_v21 = vsel %vm430_vm6, %v621_v19, -inf }
 0x1e8   : > { %532 = vmax.xlane.f32.xlu0 %v531_v16  ;;  %v713_v25 = vsel %vm430_vm6, %v712_v24, -inf }
 0x1f0   : > { %623 = vmax.xlane.f32.xlu0 %v622_v21 }
 0x1f8   : > { %714 = vmax.xlane.f32.xlu0 %v713_v25 }
 0x20c   : > { %632 = vrot.lane.b32.xlu0 %v1147_v22, %s1026_s21 }
 0x259   : > { %v433_v26 = vpop.xlane.xlu2 %432 }
 0x25a   : > { %v434_v27 = vsub.f32 %v429_v10, %v433_v26 }
 0x25b   : > { %v533_v28 = vpop.xlane.xlu0 %532 }
 0x25c   : > { %v435_v30 = vmul.f32 1.442695, %v434_v27  ;;  %v534_v31 = vsub.f32 %v530_v15, %v533_v28 }
 0x25e   : > { %944 = vpow2.f32 %v435_v30  ;;  %v535_v29 = vmul.f32 1.442695, %v534_v31 }
 0x260   : > { %946 = vpow2.f32 %v535_v29 }
 0x263   : > { %v624_v32 = vpop.xlane.xlu0 %623 }
 0x264   : > { %v945_v33 = vpop.eup %944  ;;  %v625_v34 = vsub.f32 %v621_v19, %v624_v32 }
 0x265   : > { %v437_v35 = vsel %vm430_vm6, %v945_v33, 0.0  ;;  %v440_v36 = vpack.c.bf16 %v945_v33, %v945_v33 }
 0x266   : > { %v947_v37 = vpop.eup %946  ;;  %v626_v38 = vmul.f32 1.442695, %v625_v34  ;;  %438 = vadd.xlane.f32.xlu1 %v437_v35 }
 0x267   : > { %881 = vmatmul.msk.bf16.vlgmr.msra.gmra.mxu2 %vm430_vm6, %v440_v36  ;;  %v537_v22 = vsel %vm430_vm6, %v947_v37, 0.0  ;;  %v540_v39 = vpack.c.bf16 %v947_v37, %v947_v37 }
 0x268   : > { %948 = vpow2.f32 %v626_v38  ;;  %538 = vadd.xlane.f32.xlu0 %v537_v22  ;;  %888 = vmatpush.msk.msra.mxu2 %vm481_vm10, %v666_v52 }
 0x269   : > { %884 = vmatmul.msk.bf16.vlgmr.msra.gmra.mxu3 %vm430_vm6, %v540_v39 }
 0x26b   : > { %v715_v40 = vpop.xlane.xlu0 %714 }
 0x26c   : > { %v716_v41 = vsub.f32 %v712_v24, %v715_v40 }
 0x26e   : > { %v949_v42 = vpop.eup %948  ;;  %v717_v43 = vmul.f32 1.442695, %v716_v41 }
 0x26f   : > { %v628_v44 = vsel %vm430_vm6, %v949_v42, 0.0  ;;  %v631_v49 = vpack.c.bf16 %v949_v42, %v949_v42 }
 0x270   : > { %950 = vpow2.f32 %v717_v43  ;;  %629 = vadd.xlane.f32.xlu1 %v628_v44 }
 0x276   : > { %v951_v45 = vpop.eup %950 }
 0x277   : > { %v719_v46 = vsel %vm430_vm6, %v951_v45, 0.0  ;;  %v722_v47 = vpack.c.bf16 %v951_v45, %v951_v45 }
 0x278   : > { %720 = vadd.xlane.f32.xlu1 %v719_v46  ;;  %v943_v46 = vld [vmem:[%s1234_s7] ss:$0 sm:$0xff] }
 0x279   : > { %890 = vmatmul.msk.bf16.vlgmr.msrb.gmra.mxu3 %vm430_vm6, %v722_v47 }
 0x27e   : > { %v633_v48 = vpop.permute.xlu0 %632 }
 0x27f   : > { %645 = vmatpush.bf16.msrb.mxu1 %v633_v48 }
 0x282   : > { %887 = vmatmul.msk.bf16.vlgmr.msrb.gmra.mxu1 %vm430_vm6, %v631_v49 }
 0x2d9   : > { %v439_v54 = vpop.xlane.xlu1 %438 }
 0x2da   : > { %952 = vrcp.f32 %v439_v54  ;;  %v474_v62 = vand.u32 2147483648, %v439_v54  ;;  %v472_v1 = vand.u32 2147483647, %v439_v54  ;;  %vm468_vm12 = vweird.f32 %v439_v54 }
 0x2db   : > { %v539_v55 = vpop.xlane.xlu0 %538 }
 0x2dc   : > { %954 = vrcp.f32 %v539_v55  ;;  %v571_v2 = vand.u32 2147483648, %v539_v55  ;;  %v569_v5 = vand.u32 2147483647, %v539_v55  ;;  %v475_v6 = vor.u32 1.1754944e-38, %v474_v62 }
 0x2dd   : > { %vm565_vm15 = vweird.f32 %v539_v55  ;;  %vm473_vm0 = vcmp.eq.f32.partialorder %v472_v1, 8.507059e+37 }
 0x2de   : > { %v572_v12 = vor.u32 1.1754944e-38, %v571_v2  ;;  %vm570_vm3 = vcmp.eq.f32.partialorder %v569_v5, 8.507059e+37 }
 0x2e0   : > { %v953_v56 = vpop.eup %952 }
 0x2e1   : > { %v464_v57 = vmul.f32 %v953_v56, %v439_v54  ;;  %vm469_vm11 = vweird.f32 %v953_v56 }
 0x2e2   : > { %v955_v58 = vpop.eup %954  ;;  %vm470_vm14 = vmor %vm468_vm12, %vm469_vm11 }
 0x2e3   : > { %v465_v59 = vsub.f32 1.0, %v464_v57  ;;  %v561_v60 = vmul.f32 %v955_v58, %v539_v55  ;;  %v1181_v61 = vpop.xlane.xlu1 %629  ;;  %vm566_vm13 = vweird.f32 %v955_v58 }
 0x2e4   : > { %956 = vrcp.f32 %v1181_v61  ;;  %vm567_vm1 = vmor %vm565_vm15, %vm566_vm13  ;;  %v662_v33 = vand.u32 2147483648, %v1181_v61  ;;  %vm656_vm8 = vweird.f32 %v1181_v61  ;;  %v660_v35 = vand.u32 2147483647, %v1181_v61 }
 0x2e5   : > { %v562_v63 = vsub.f32 1.0, %v561_v60  ;;  %v466_v0 = vmul.f32 %v953_v56, %v465_v59 }
 0x2e6   : > { %v663_v40 = vor.u32 1.1754944e-38, %v662_v33  ;;  %vm661_vm11 = vcmp.eq.f32.partialorder %v660_v35, 8.507059e+37 }
 0x2e7   : > { %v563_v3 = vmul.f32 %v955_v58, %v562_v63  ;;  %v467_v4 = vadd.f32 %v953_v56, %v466_v0 }
 0x2e9   : > { %v471_v7 = vsel %vm470_vm14, %v953_v56, %v467_v4  ;;  %v564_v8 = vadd.f32 %v955_v58, %v563_v3 }
 0x2ea   : > { %v957_v9 = vpop.eup %956  ;;  %v459_v10 = vpop.f32.mrf.mxu2  ;;  %v476_v11 = vsel %vm473_vm0, %v475_v6, %v471_v7 }
 0x2eb   : > { %v477_v13 = vmul.f32 %v476_v11, %v459_v10  ;;  %v721_v14 = vpop.xlane.xlu1 %720  ;;  %v568_v15 = vsel %vm567_vm1, %v955_v58, %v564_v8  ;;  %v652_v16 = vmul.f32 %v957_v9, %v1181_v61  ;;  %vm657_vm5 = vweird.f32 %v957_v9 }
 0x2ec   : > { %958 = vrcp.f32 %v721_v14  ;;  %v556_v17 = vpop.f32.mrf.mxu3  ;;  %v573_v18 = vsel %vm570_vm3, %v572_v12, %v568_v15  ;;  %v753_v28 = vand.u32 2147483648, %v721_v14  ;;  %v751_v31 = vand.u32 2147483647, %v721_v14  ;;  %vm658_vm10 = vmor %vm656_vm8, %vm657_vm5 }
 0x2ed   : > { %v574_v19 = vmul.f32 %v573_v18, %v556_v17  ;;  %883 = vmatmul.msk.f32.vlgmr.msrb.gmra.mxu2 %vm421_vm2, %v477_v13  ;;  %v653_v20 = vsub.f32 1.0, %v652_v16  ;;  %vm747_vm6 = vweird.f32 %v721_v14 }
 0x2ee   : > { %v754_v34 = vor.u32 1.1754944e-38, %v753_v28  ;;  %vm752_vm9 = vcmp.eq.f32.partialorder %v751_v31, 8.507059e+37 }
 0x2ef   : > { %886 = vmatmul.msk.f32.vlgmr.msrb.gmra.mxu0 %vm421_vm2, %v574_v19  ;;  %v654_v26 = vmul.f32 %v957_v9, %v653_v20 }
 0x2f1   : > { %v655_v29 = vadd.f32 %v957_v9, %v654_v26 }
 0x2f2   : > { %v959_v21 = vpop.eup %958  ;;  %v461_v23 = vpop.f32.mrf.mxu2 }
 0x2f3   : > { %v743_v24 = vmul.f32 %v959_v21, %v721_v14  ;;  %vm748_vm4 = vweird.f32 %v959_v21  ;;  %v659_v22 = vsel %vm658_vm10, %v957_v9, %v655_v29 }
 0x2f4   : > { %v558_v25 = vpop.f32.mrf.mxu3  ;;  %vm749_vm7 = vmor %vm747_vm6, %vm748_vm4  ;;  %v664_v42 = vsel %vm661_vm11, %v663_v40, %v659_v22 }
 0x2f5   : > { %v744_v27 = vsub.f32 1.0, %v743_v24 }
 0x2f7   : > { %v745_v30 = vmul.f32 %v959_v21, %v744_v27 }
 0x2f9   : > { %v746_v32 = vadd.f32 %v959_v21, %v745_v30 }
 0x2fb   : > { %v750_v36 = vsel %vm749_vm7, %v959_v21, %v746_v32 }
 0x2fc   : > { %v738_v37 = vpop.f32.mrf.mxu3  ;;  %v755_v38 = vsel %vm752_vm9, %v754_v34, %v750_v36 }
 0x2fd   : > { %v756_v39 = vmul.f32 %v755_v38, %v738_v37 }
 0x2ff   : > { %v647_v41 = vpop.f32.mrf.mxu1  ;;  %892 = vmatmul.msk.f32.vlgmr.msra.gmra.mxu0 %vm421_vm2, %v756_v39 }
 0x300   : > { %v665_v43 = vmul.f32 %v664_v42, %v647_v41 }
 0x302   : > { %889 = vmatmul.msk.f32.vlgmr.msra.gmra.mxu2 %vm421_vm2, %v665_v43 }
 0x304   : > { %v740_v44 = vpop.f32.mrf.mxu3 }
 0x307   : > { %v649_v45 = vpop.f32.mrf.mxu1 }
 0x36c   : > { %v598_v48 = vpop.f32.mrf.mxu0 }
 0x370   : > { %v502_v47 = vpop.f32.mrf.mxu2 }
 0x371   : > { %v508_v49 = vadd.f32 %v943_v46, %v502_v47 }
 0x373   : > { %v601_v50 = vadd.f32 %v598_v48, %v508_v49 }
 0x37c   : > { %v780_v53 = vpop.f32.mrf.mxu0 }
 0x385   : > { %v689_v51 = vpop.f32.mrf.mxu2 }
 0x386   : > { %v692_v52 = vadd.f32 %v689_v51, %v601_v50 }
 0x388   : > { %v783_v54 = vadd.f32 %v780_v53, %v692_v52 }
 0x38a   : > { %784 = vst [vmem:[%s309_s24] sm:$0xff] %v783_v54 }
 0x38b   : > { %987 = shalt.err (!%p984_p3)
}
 0x38c   : > { %897 = dma.vmem_to_hbm [thread:$0]  (%p1111_p5), %s799_s25, 128, %s801_s26, %s786_s19  }
 0x38d PF: > { %p903_p4 = scmp.ge.s32.totalorder %s1022_s30, 2  ;;  %s812_s13 = sand.u32 1, %s1010_s27  }
 0x38e   : > { %s813_s22 = scalar_lea.sflag [#allocation3], %s812_s13 }
 0x38f   : > { %p900_p7 = pnand %p903_p4, %p1115_p6 }
 0x391   : > { %p901_p8 = pneg %p900_p7 }
 0x393   : > { %1005 = dma.done.wait (%p901_p8), %s813_s22, 128  }
 0x394   : > { %1007 = vsyncadd (%p901_p8), %s813_s22, 4294967168  ;;  %p18_p9 = scmp.ge.s32.totalorder %s1098_s11, 4   ;;  %s1238_s27 = smov %s1014_s28 }
 0x395   : > { %s1239_s28 = smov %s1018_s29  ;;  %s1240_s29 = smov %s1109_s14 }
 0x396   : > { %s1241_s30 = smov %s1098_s11  ;;  %20 = sbr.rel (!%p18_p9) target bundleno = 3 (0x3), region = 90 }
 0x39b   :  { %819 = vsyncpa [#allocation3], 1 }
 0x39c   :  { %821 = vsyncpa [#allocation3 + $0x1], 1 }

</bundles_post_ra>
